<compile_context>
chip_gen: v5e
topology: v5e:2x2
jax: 0.10.0
libtpu: 0.0.40
codegen_flags: <defaults>
</compile_context>

<pallas_src>
import functools
import math

import jax
import jax.numpy as jnp
from jax.experimental import pallas as pl
from jax.experimental.pallas import tpu as pltpu


def _round_up(x, m):
    return ((x + m - 1) // m) * m


def _cdiv(a, b):
    return (a + b - 1) // b


def _mlp_kernel(x_ref,
                w0_ref, b0_ref,
                w1_ref, b1_ref,
                w2_ref, b2_ref,
                w3_ref, b3_ref,
                o_ref):
    """Fused 4-layer MLP on one (row-packed) batch tile.

    x arrives as f32 straight from HBM; the f32->bf16 cast is VPU work that
    hides under the input DMA.  Matmuls run bf16 x bf16 -> f32 on the MXU;
    bias-add + relu happen on the f32 accumulator.
    """
    x = x_ref[...].astype(jnp.bfloat16)

    h = jnp.dot(x, w0_ref[...], preferred_element_type=jnp.float32)
    h = jnp.maximum(h + b0_ref[...], 0.0)

    h = jnp.dot(h.astype(jnp.bfloat16), w1_ref[...],
                preferred_element_type=jnp.float32)
    h = jnp.maximum(h + b1_ref[...], 0.0)

    h = jnp.dot(h.astype(jnp.bfloat16), w2_ref[...],
                preferred_element_type=jnp.float32)
    h = jnp.maximum(h + b2_ref[...], 0.0)

    h = jnp.dot(h.astype(jnp.bfloat16), w3_ref[...],
                preferred_element_type=jnp.float32)
    h = h + b3_ref[...]

    o_ref[...] = h.astype(o_ref.dtype)


def _row_pack_factor(l, max_weight_bytes=4 << 20):
    """Smallest P such that every packed feature dim P*l[i] is a multiple of 128.

    Falls back to P=1 (lane-sparse but still correct) if the block-diagonal
    replicated weights would get too big to keep VMEM-resident.
    """
    p = 1
    for d in l:
        p = math.lcm(p, 128 // math.gcd(128, d))
    blockdiag_bytes = sum(p * l[i] * p * l[i + 1] * 2 for i in range(4))
    if blockdiag_bytes > max_weight_bytes:
        return 1
    return p


def dnn_base_forward(x, params, l, tile_rows=16384):
    """DNN_base forward pass via a single batch-tiled fused Pallas kernel.

    x: any shape whose total size is divisible by l[0] (mirrors x.view(-1, l[0]))
    params: dict with 'w0'..'w3' of shape [in, out] and 'b0'..'b3' of shape [1, out]
    tile_rows: target logical rows per grid step (amortizes per-step overhead).
    """
    x2d = x.reshape(-1, l[0]).astype(jnp.float32)   # no-op if already f32
    batch = x2d.shape[0]

    # ---- lane-dense row packing factor ------------------------------------
    P = _row_pack_factor(l)

    # ---- grid / tile selection (in packed-row units) ----------------------
    packed_rows = _cdiv(batch, P)
    max_tile = max(16, _round_up(tile_rows // P, 16))
    if packed_rows > max_tile:
        n_tiles = _cdiv(packed_rows, max_tile)
    elif packed_rows >= 256:
        # Enough work to split across v7x's two TensorCores.
        n_tiles = 2
    else:
        n_tiles = 1
    # bf16 sublane packing is 16 -> round the tile's row dim to 16.
    tb = _round_up(_cdiv(packed_rows, n_tiles), 16)
    padded_packed = n_tiles * tb
    padded = padded_packed * P          # logical rows after padding

    if padded != batch:
        x2d = jnp.pad(x2d, ((0, padded - batch), (0, 0)))

    # Pack P consecutive logical rows into one physical row: (padded/P, P*l0).
    # Contiguous in HBM, so this reshape (and the inverse on the output) is free.
    d_in, d_out = P * l[0], P * l[4]
    x_packed = x2d.reshape(padded_packed, d_in)

    # Block-diagonal replicated weights W' = kron(I_P, W) and tiled biases, so
    # the packed layout is mathematically identical to the per-row MLP.
    eye = jnp.eye(P, dtype=jnp.float32)
    w = [jnp.kron(eye, params[f"w{i}"].astype(jnp.float32)).astype(jnp.bfloat16)
         for i in range(4)]
    b = [jnp.tile(params[f"b{i}"].astype(jnp.float32), (1, P)) for i in range(4)]

    grid = (padded_packed // tb,)

    x_spec = pl.BlockSpec((tb, d_in), lambda i: (i, 0))
    out_spec = pl.BlockSpec((tb, d_out), lambda i: (i, 0))

    def _const_spec(shape):
        # Full-extent block, same block index every grid step -> stays resident
        # in VMEM for the whole grid (no per-step refetch).
        return pl.BlockSpec(shape, lambda i: (0, 0))

    in_specs = [x_spec]
    for i in range(4):
        in_specs.append(_const_spec((P * l[i], P * l[i + 1])))   # weight
        in_specs.append(_const_spec((1, P * l[i + 1])))          # bias

    flops = 2 * padded * sum(l[i] * l[i + 1] for i in range(4))
    bytes_accessed = (
        padded * l[0] * 4                                        # x (f32 in)
        + padded * l[4] * 4                                      # out (f32)
        + sum(P * l[i] * P * l[i + 1] * 2 for i in range(4))     # weights (bf16)
        + sum(P * l[i + 1] * 4 for i in range(4))                # biases (f32)
    )

    out = pl.pallas_call(
        _mlp_kernel,
        out_shape=jax.ShapeDtypeStruct((padded_packed, d_out), jnp.float32),
        grid=grid,
        in_specs=in_specs,
        out_specs=out_spec,
        compiler_params=pltpu.CompilerParams(
            dimension_semantics=("parallel",),
            # Above v5e's 16 MiB scoped default, comfortably under v7x's
            # 64 MiB physical VMEM; double-buffered x/out tiles at the default
            # tile size need ~10 MiB, temporaries a few MiB more.
            vmem_limit_bytes=40 * 1024 * 1024),
        cost_estimate=pl.CostEstimate(
            flops=flops, transcendentals=0, bytes_accessed=bytes_accessed),
    )(
        x_packed,
        w[0], b[0],
        w[1], b[1],
        w[2], b[2],
        w[3], b[3],
    )

    out = out.reshape(padded, l[4])
    if padded != batch:
        out = out[:batch]
    return out


def init_params(key, l):
    """Deterministic init mirroring nn.Linear defaults (U(-1/sqrt(fan_in), ...)).

    Weights are stored transposed: [in_features, out_features].
    Biases are stored as [1, out_features] for TPU-friendly 2-D layout.
    """
    params = {}
    for i in range(4):
        fan_in, fan_out = l[i], l[i + 1]
        key, kw, kb = jax.random.split(key, 3)
        bound = 1.0 / (fan_in ** 0.5)
        params[f"w{i}"] = jax.random.uniform(
            kw, (fan_in, fan_out), jnp.float32, minval=-bound, maxval=bound)
        params[f"b{i}"] = jax.random.uniform(
            kb, (1, fan_out), jnp.float32, minval=-bound, maxval=bound)
    return params


def reference_forward_bf16(x, params, l):
    """Plain-JAX reference mirroring the kernel's bf16-in / f32-accumulate math."""
    h = x.reshape(-1, l[0]).astype(jnp.float32)
    for i in range(4):
        a = h.astype(jnp.bfloat16)
        wi = params[f"w{i}"].astype(jnp.bfloat16)
        h = jnp.dot(a, wi, preferred_element_type=jnp.float32) + params[f"b{i}"]
        if i < 3:
            h = jnp.maximum(h, 0.0)
    return h


def reference_forward_f32(x, params, l):
    """Full-f32 reference matching the original PyTorch semantics."""
    h = x.reshape(-1, l[0]).astype(jnp.float32)
    h = jnp.maximum(h @ params["w0"] + params["b0"], 0.0)
    h = jnp.maximum(h @ params["w1"] + params["b1"], 0.0)
    h = jnp.maximum(h @ params["w2"] + params["b2"], 0.0)
    h = h @ params["w3"] + params["b3"]
    return h


if __name__ == "__main__":
    # Layer sizes l = [in, h1, h2, h3, out]
    l = [64, 32, 32, 32, 16]

    key = jax.random.PRNGKey(0)
    key, kx = jax.random.split(key)

    # Input: (8, 4, 16) -> view(-1, 64) gives a batch of 8 rows of 64 features.
    # (The kernel's tiling/packing pays off at large batch; at this size it is
    #  just a correctness exercise.)
    x = jax.random.normal(kx, (8, 4, 16), dtype=jnp.float32)

    params = init_params(jax.random.PRNGKey(0), l)

    fwd = functools.partial(dnn_base_forward, l=l, tile_rows=16384)
    out = fwd(x, params)
    out = jax.block_until_ready(out)

    ref_bf16 = reference_forward_bf16(x, params, l)
    ref_f32 = reference_forward_f32(x, params, l)

    assert out.shape == (8, l[4])
    # Tight check vs the bf16-in / f32-accumulate reference (matches kernel math).
    assert jnp.allclose(out, ref_bf16, atol=1e-3, rtol=1e-3), \
        "mismatch vs bf16 reference"
    # Loose sanity check vs the full-f32 PyTorch-equivalent reference.
    assert jnp.allclose(out, ref_f32, atol=5e-2, rtol=5e-2), \
        "mismatch vs f32 reference"

    print("KERNEL_OK")
</pallas_src>

<mosaic_0001>
module attributes {stable_mosaic.version = 11 : i64} {
  func.func @_mlp_kernel(%arg0: i32, %arg1: memref<16x512xf32, #tpu.memory_space<vmem>>, %arg2: memref<512x256xbf16, #tpu.memory_space<vmem>>, %arg3: memref<1x256xf32, #tpu.memory_space<vmem>>, %arg4: memref<256x256xbf16, #tpu.memory_space<vmem>>, %arg5: memref<1x256xf32, #tpu.memory_space<vmem>>, %arg6: memref<256x256xbf16, #tpu.memory_space<vmem>>, %arg7: memref<1x256xf32, #tpu.memory_space<vmem>>, %arg8: memref<256x128xbf16, #tpu.memory_space<vmem>>, %arg9: memref<1x128xf32, #tpu.memory_space<vmem>>, %arg10: memref<16x128xf32, #tpu.memory_space<vmem>>) attributes {dimension_semantics = [#tpu.dimension_semantics<parallel>], iteration_bounds = array<i64: 1>, scalar_prefetch = 0 : i64, scratch_operands = 0 : i64, tpu.core_type = #tpu.core_type<tc>, window_params = [{transform_indices = @transform_0, window_bounds = array<i64: 16, 512>}, {pipeline_mode = #tpu.pipeline_mode<synchronous>, transform_indices = @transform_1, window_bounds = array<i64: 512, 256>}, {pipeline_mode = #tpu.pipeline_mode<synchronous>, transform_indices = @transform_2, window_bounds = array<i64: 1, 256>}, {pipeline_mode = #tpu.pipeline_mode<synchronous>, transform_indices = @transform_3, window_bounds = array<i64: 256, 256>}, {pipeline_mode = #tpu.pipeline_mode<synchronous>, transform_indices = @transform_4, window_bounds = array<i64: 1, 256>}, {pipeline_mode = #tpu.pipeline_mode<synchronous>, transform_indices = @transform_5, window_bounds = array<i64: 256, 256>}, {pipeline_mode = #tpu.pipeline_mode<synchronous>, transform_indices = @transform_6, window_bounds = array<i64: 1, 256>}, {pipeline_mode = #tpu.pipeline_mode<synchronous>, transform_indices = @transform_7, window_bounds = array<i64: 256, 128>}, {pipeline_mode = #tpu.pipeline_mode<synchronous>, transform_indices = @transform_8, window_bounds = array<i64: 1, 128>}, {transform_indices = @transform_9, window_bounds = array<i64: 16, 128>}]} {
    %c0 = arith.constant 0 : index
    %c0_0 = arith.constant 0 : index
    %0 = vector.load %arg1[%c0, %c0_0] : memref<16x512xf32, #tpu.memory_space<vmem>>, vector<16x512xf32>
    %1 = arith.truncf %0 : vector<16x512xf32> to vector<16x512xbf16>
    %c0_1 = arith.constant 0 : index
    %c0_2 = arith.constant 0 : index
    %2 = vector.load %arg2[%c0_1, %c0_2] : memref<512x256xbf16, #tpu.memory_space<vmem>>, vector<512x256xbf16>
    %cst = arith.constant dense<0.000000e+00> : vector<16x256xf32>
    %3 = tpu.matmul %1, %2, %cst {dimension_numbers = #tpu.dot_dimension_numbers<[1], [0], [0], [1], [0, 0, 1, 1], [], []>} : vector<16x512xbf16>, vector<512x256xbf16>, vector<16x256xf32> -> vector<16x256xf32>
    %c0_3 = arith.constant 0 : index
    %c0_4 = arith.constant 0 : index
    %4 = vector.load %arg3[%c0_3, %c0_4] : memref<1x256xf32, #tpu.memory_space<vmem>>, vector<1x256xf32>
    %5 = vector.broadcast %4 : vector<1x256xf32> to vector<16x256xf32>
    %6 = arith.addf %3, %5 : vector<16x256xf32>
    %cst_5 = arith.constant 0.000000e+00 : f32
    %7 = vector.broadcast %cst_5 : f32 to vector<16x256xf32>
    %8 = arith.maximumf %6, %7 : vector<16x256xf32>
    %9 = arith.truncf %8 : vector<16x256xf32> to vector<16x256xbf16>
    %c0_6 = arith.constant 0 : index
    %c0_7 = arith.constant 0 : index
    %10 = vector.load %arg4[%c0_6, %c0_7] : memref<256x256xbf16, #tpu.memory_space<vmem>>, vector<256x256xbf16>
    %cst_8 = arith.constant dense<0.000000e+00> : vector<16x256xf32>
    %11 = tpu.matmul %9, %10, %cst_8 {dimension_numbers = #tpu.dot_dimension_numbers<[1], [0], [0], [1], [0, 0, 1, 1], [], []>} : vector<16x256xbf16>, vector<256x256xbf16>, vector<16x256xf32> -> vector<16x256xf32>
    %c0_9 = arith.constant 0 : index
    %c0_10 = arith.constant 0 : index
    %12 = vector.load %arg5[%c0_9, %c0_10] : memref<1x256xf32, #tpu.memory_space<vmem>>, vector<1x256xf32>
    %13 = vector.broadcast %12 : vector<1x256xf32> to vector<16x256xf32>
    %14 = arith.addf %11, %13 : vector<16x256xf32>
    %cst_11 = arith.constant 0.000000e+00 : f32
    %15 = vector.broadcast %cst_11 : f32 to vector<16x256xf32>
    %16 = arith.maximumf %14, %15 : vector<16x256xf32>
    %17 = arith.truncf %16 : vector<16x256xf32> to vector<16x256xbf16>
    %c0_12 = arith.constant 0 : index
    %c0_13 = arith.constant 0 : index
    %18 = vector.load %arg6[%c0_12, %c0_13] : memref<256x256xbf16, #tpu.memory_space<vmem>>, vector<256x256xbf16>
    %cst_14 = arith.constant dense<0.000000e+00> : vector<16x256xf32>
    %19 = tpu.matmul %17, %18, %cst_14 {dimension_numbers = #tpu.dot_dimension_numbers<[1], [0], [0], [1], [0, 0, 1, 1], [], []>} : vector<16x256xbf16>, vector<256x256xbf16>, vector<16x256xf32> -> vector<16x256xf32>
    %c0_15 = arith.constant 0 : index
    %c0_16 = arith.constant 0 : index
    %20 = vector.load %arg7[%c0_15, %c0_16] : memref<1x256xf32, #tpu.memory_space<vmem>>, vector<1x256xf32>
    %21 = vector.broadcast %20 : vector<1x256xf32> to vector<16x256xf32>
    %22 = arith.addf %19, %21 : vector<16x256xf32>
    %cst_17 = arith.constant 0.000000e+00 : f32
    %23 = vector.broadcast %cst_17 : f32 to vector<16x256xf32>
    %24 = arith.maximumf %22, %23 : vector<16x256xf32>
    %25 = arith.truncf %24 : vector<16x256xf32> to vector<16x256xbf16>
    %c0_18 = arith.constant 0 : index
    %c0_19 = arith.constant 0 : index
    %26 = vector.load %arg8[%c0_18, %c0_19] : memref<256x128xbf16, #tpu.memory_space<vmem>>, vector<256x128xbf16>
    %cst_20 = arith.constant dense<0.000000e+00> : vector<16x128xf32>
    %27 = tpu.matmul %25, %26, %cst_20 {dimension_numbers = #tpu.dot_dimension_numbers<[1], [0], [0], [1], [0, 0, 1, 1], [], []>} : vector<16x256xbf16>, vector<256x128xbf16>, vector<16x128xf32> -> vector<16x128xf32>
    %c0_21 = arith.constant 0 : index
    %c0_22 = arith.constant 0 : index
    %28 = vector.load %arg9[%c0_21, %c0_22] : memref<1x128xf32, #tpu.memory_space<vmem>>, vector<1x128xf32>
    %29 = vector.broadcast %28 : vector<1x128xf32> to vector<16x128xf32>
    %30 = arith.addf %27, %29 : vector<16x128xf32>
    %c0_23 = arith.constant 0 : index
    %c0_24 = arith.constant 0 : index
    %31 = vector.load %arg10[%c0_23, %c0_24] : memref<16x128xf32, #tpu.memory_space<vmem>>, vector<16x128xf32>
    tpu.vector_store %arg10[%c0_23, %c0_24], %30 {strides = array<i32>} : memref<16x128xf32, #tpu.memory_space<vmem>>, vector<16x128xf32>,
    return
  }
  func.func @transform_0(%arg0: i32) -> (i32, i32) {
    %c0_i32 = arith.constant 0 : i32
    %c0_i32_0 = arith.constant 0 : i32
    return %arg0, %c0_i32 : i32, i32
  }
  func.func @transform_1(%arg0: i32) -> (i32, i32) {
    %c0_i32 = arith.constant 0 : i32
    %c0_i32_0 = arith.constant 0 : i32
    %c0_i32_1 = arith.constant 0 : i32
    return %c0_i32, %c0_i32_0 : i32, i32
  }
  func.func @transform_2(%arg0: i32) -> (i32, i32) {
    %c0_i32 = arith.constant 0 : i32
    %c0_i32_0 = arith.constant 0 : i32
    %c0_i32_1 = arith.constant 0 : i32
    return %c0_i32, %c0_i32_0 : i32, i32
  }
  func.func @transform_3(%arg0: i32) -> (i32, i32) {
    %c0_i32 = arith.constant 0 : i32
    %c0_i32_0 = arith.constant 0 : i32
    %c0_i32_1 = arith.constant 0 : i32
    return %c0_i32, %c0_i32_0 : i32, i32
  }
  func.func @transform_4(%arg0: i32) -> (i32, i32) {
    %c0_i32 = arith.constant 0 : i32
    %c0_i32_0 = arith.constant 0 : i32
    %c0_i32_1 = arith.constant 0 : i32
    return %c0_i32, %c0_i32_0 : i32, i32
  }
  func.func @transform_5(%arg0: i32) -> (i32, i32) {
    %c0_i32 = arith.constant 0 : i32
    %c0_i32_0 = arith.constant 0 : i32
    %c0_i32_1 = arith.constant 0 : i32
    return %c0_i32, %c0_i32_0 : i32, i32
  }
  func.func @transform_6(%arg0: i32) -> (i32, i32) {
    %c0_i32 = arith.constant 0 : i32
    %c0_i32_0 = arith.constant 0 : i32
    %c0_i32_1 = arith.constant 0 : i32
    return %c0_i32, %c0_i32_0 : i32, i32
  }
  func.func @transform_7(%arg0: i32) -> (i32, i32) {
    %c0_i32 = arith.constant 0 : i32
    %c0_i32_0 = arith.constant 0 : i32
    %c0_i32_1 = arith.constant 0 : i32
    return %c0_i32, %c0_i32_0 : i32, i32
  }
  func.func @transform_8(%arg0: i32) -> (i32, i32) {
    %c0_i32 = arith.constant 0 : i32
    %c0_i32_0 = arith.constant 0 : i32
    %c0_i32_1 = arith.constant 0 : i32
    return %c0_i32, %c0_i32_0 : i32, i32
  }
  func.func @transform_9(%arg0: i32) -> (i32, i32) {
    %c0_i32 = arith.constant 0 : i32
    %c0_i32_0 = arith.constant 0 : i32
    return %arg0, %c0_i32 : i32, i32
  }
}

</mosaic_0001>

<bundles_post_ra>
// kernel: tpu_custom_call.1
= control target key start
LH: loop header
LB: loop body
LE: loop exit
PB: predicated region body
PF: predicated region fallthrough
CT: control target
= control target key end

     0   :  { %14 = vsyncpa [#allocation3], 0  ;;  %s2386_s0 = inlined_call_operand.hbm [shape: f32[16,512], index: 0, kind: input, shape index: {}]   ;;  %s2387_s1 = inlined_call_operand.hbm [shape: bf16[512,256], index: 1, kind: input, shape index: {}]   ;;  %s2388_s2 = inlined_call_operand.hbm [shape: f32[1,256], index: 2, kind: input, shape index: {}]   ;;  %s2389_s3 = inlined_call_operand.hbm [shape: bf16[256,256], index: 3, kind: input, shape index: {}]   ;;  %s2390_s4 = inlined_call_operand.vmem [shape: f32[1,256], index: 4, kind: input, shape index: {}]   ;;  %s2391_s5 = inlined_call_operand.hbm [shape: bf16[256,256], index: 5, kind: input, shape index: {}]   ;;  %s2392_s6 = inlined_call_operand.vmem [shape: f32[1,256], index: 6, kind: input, shape index: {}]   ;;  %s2393_s7 = inlined_call_operand.hbm [shape: bf16[256,128], index: 7, kind: input, shape index: {}]   ;;  %s2394_s8 = inlined_call_operand.vmem [shape: f32[1,128], index: 8, kind: input, shape index: {}]   ;;  %s2395_s9 = inlined_call_operand.hbm [shape: f32[16,128], index: 9, kind: output, shape index: {}]  }
   0x1   :  { %15 = vsyncpa [#allocation6], 0 }
   0x2   :  { %16 = vsyncpa [#allocation9], 0 }
   0x3   :  { %17 = vsyncpa [#allocation12], 0  ;;  %s36_s11 = sshll.u32 %s2387_s1, 4  ;;  %s37_s11 = int_to_ptr.hbm [resolvable:$true] %s36_s11 }
   0x4   :  { %18 = vsyncpa [#allocation4], 0  ;;  %s2261_s12 = smov [#allocation5]   ;;  %s60_s16 = sshll.u32 %s2389_s3, 4  ;;  %s61_s16 = int_to_ptr.hbm [resolvable:$true] %s60_s16 }
   0x5   :  { %s38_s13 = sshll.u32 %s2261_s12, 4  ;;  %s2262_s17 = smov 128   ;;  %s39_s13 = int_to_ptr.vmem [resolvable:$true] %s38_s13 }
   0x6   :  { %s2263_s18 = smov 8   ;;  %s2264_s19 = smov [#allocation8]  }
   0x7   :  { %44 = dma.hbm_to_vmem [thread:$0]  %s37_s11, 8192, %s39_s13, [#allocation6], %s2262_s17, %s2262_s17, %s2263_s18  }
   0x8   :  { %s62_s20 = sshll.u32 %s2264_s19, 4  ;;  %s23_s22 = sshll.u32 %s2386_s0, 4  ;;  %s63_s20 = int_to_ptr.vmem [resolvable:$true] %s62_s20  ;;  %s24_s22 = int_to_ptr.hbm [resolvable:$true] %s23_s22 }
   0x9   :  { %68 = dma.hbm_to_vmem [thread:$0]  %s61_s16, 4096, %s63_s20, [#allocation9], %s2262_s17, %s2262_s17, %s2263_s18  }
   0xa   :  { %s2265_s3 = smov [#allocation2]   ;;  %s50_s26 = sshll.u32 %s2388_s2, 4  ;;  %s51_s26 = int_to_ptr.hbm [resolvable:$true] %s50_s26 }
   0xb   :  { %s25_s23 = sshll.u32 %s2265_s3, 4  ;;  %s2266_s27 = smov 512   ;;  %s26_s23 = int_to_ptr.vmem [resolvable:$true] %s25_s23 }
   0xc   :  { %s2267_s28 = smov 32   ;;  %s2268_s29 = smov [#allocation7]  }
   0xd   :  { %31 = dma.hbm_to_vmem [thread:$0]  %s24_s22, 1024, %s26_s23, [#allocation3], %s2266_s27, %s2266_s27, %s2267_s28  }
   0xe   :  { %s52_s30 = sshll.u32 %s2268_s29, 4  ;;  %s75_s11 = sshll.u32 %s2391_s5, 4  ;;  %s53_s30 = int_to_ptr.vmem [resolvable:$true] %s52_s30  ;;  %s76_s11 = int_to_ptr.hbm [resolvable:$true] %s75_s11 }
   0xf   :  { %55 = dma.hbm_to_vmem [thread:$0]  %s51_s26, 32, %s53_s30, [#allocation6]  }
  0x10   :  { %s90_s14 = sshll.u32 %s2393_s7, 4  ;;  %s2269_s15 = smov [#allocation10]   ;;  %s91_s14 = int_to_ptr.hbm [resolvable:$true] %s90_s14 }
  0x11   :  { %s77_s16 = sshll.u32 %s2269_s15, 4  ;;  %s2270_s2 = smov [#allocation11]   ;;  %s78_s16 = int_to_ptr.vmem [resolvable:$true] %s77_s16 }
  0x12   :  { %83 = dma.hbm_to_vmem [thread:$0]  %s76_s11, 4096, %s78_s16, [#allocation9], %s2262_s17, %s2262_s17, %s2263_s18  }
  0x13   :  { %s92_s19 = sshll.u32 %s2270_s2, 4  ;;  %s2271_s20 = smov 64   ;;  %s93_s19 = int_to_ptr.vmem [resolvable:$true] %s92_s19 }
  0x14   :  { %s2272_s5 = smov 4  }
  0x15   :  { %98 = dma.hbm_to_vmem [thread:$0]  %s91_s14, 2048, %s93_s19, [#allocation12], %s2271_s20, %s2271_s20, %s2272_s5  }
  0x16   :  { %2251 = dma.done.wait [#allocation3], 1024  }
  0x17   :  { %2252 = vsyncadd [#allocation3], 4294966272 }
  0x18   :  { %2253 = dma.done.wait [#allocation6], 8224  }
  0x19   :  { %2254 = vsyncadd [#allocation6], 4294959072 }
  0x1a   :  { %2255 = dma.done.wait [#allocation9], 8192  }
  0x1b   :  { %2256 = vsyncadd [#allocation9], 4294959104 }
  0x1c   :  { %2257 = dma.done.wait [#allocation12], 2048  }
  0x1d   :  { %2258 = vsyncadd [#allocation12], 4294965248  ;;  %v1407_v0 = vld [vmem:[#allocation5 + $0x70] sm:$0xf]  ;;  %v1940_v1 = vld [vmem:[#allocation5 + $0x74] sm:$0xf0] }
  0x1e   :  { %v1471_v2 = vld [vmem:[#allocation5 + $0xf0] sm:$0xf]  ;;  %v1408_v3 = vor.u32 %v1940_v1, %v1407_v0  ;;  %v1956_v4 = vld [vmem:[#allocation5 + $0xf4] sm:$0xf0]  ;;  %v1399_v11 = vld [vmem:[#allocation5 + $0x60] sm:$0xf] }
  0x1f   :  { %v1535_v5 = vld [vmem:[#allocation5 + $0x170] sm:$0xf]  ;;  %v1972_v6 = vld [vmem:[#allocation5 + $0x174] sm:$0xf0]  ;;  %v1472_v7 = vor.u32 %v1956_v4, %v1471_v2  ;;  %v1938_v13 = vld [vmem:[#allocation5 + $0x64] sm:$0xf0] }
  0x20   :  { %v1536_v8 = vor.u32 %v1972_v6, %v1535_v5  ;;  %v1599_v9 = vld [vmem:[#allocation5 + $0x1f0] sm:$0xf]  ;;  %v1988_v10 = vld [vmem:[#allocation5 + $0x1f4] sm:$0xf0]  ;;  %527 = vmatpush.bf16.msra.mxu0 %v1408_v3  ;;  %v1463_v14 = vld [vmem:[#allocation5 + $0xe0] sm:$0xf]  ;;  %v1400_v16 = vor.u32 %v1938_v13, %v1399_v11 }
  0x21   :  { %v1600_v12 = vor.u32 %v1988_v10, %v1599_v9  ;;  %v1954_v15 = vld [vmem:[#allocation5 + $0xe4] sm:$0xf0]  ;;  %541 = vmatpush.bf16.msra.mxu1 %v1472_v7  ;;  %v1527_v18 = vld [vmem:[#allocation5 + $0x160] sm:$0xf]  ;;  %v1391_v23 = vld [vmem:[#allocation5 + $0x50] sm:$0xf] }
  0x22   :  { %555 = vmatpush.bf16.msra.mxu2 %v1536_v8  ;;  %v1464_v17 = vor.u32 %v1954_v15, %v1463_v14  ;;  %v1970_v19 = vld [vmem:[#allocation5 + $0x164] sm:$0xf0]  ;;  %v1591_v20 = vld [vmem:[#allocation5 + $0x1e0] sm:$0xf]  ;;  %v1936_v24 = vld [vmem:[#allocation5 + $0x54] sm:$0xf0] }
  0x23   :  { %569 = vmatpush.bf16.msra.mxu3 %v1600_v12  ;;  %v1528_v21 = vor.u32 %v1970_v19, %v1527_v18  ;;  %v1986_v22 = vld [vmem:[#allocation5 + $0x1e4] sm:$0xf0]  ;;  %v1455_v26 = vld [vmem:[#allocation5 + $0xd0] sm:$0xf]  ;;  %v1952_v27 = vld [vmem:[#allocation5 + $0xd4] sm:$0xf0]  ;;  %v1392_v29 = vor.u32 %v1936_v24, %v1391_v23 }
  0x24   :  { %v1592_v25 = vor.u32 %v1986_v22, %v1591_v20  ;;  %v1519_v28 = vld [vmem:[#allocation5 + $0x150] sm:$0xf]  ;;  %528 = vmatpush.bf16.msra.mxu0 %v1400_v16  ;;  %v1968_v30 = vld [vmem:[#allocation5 + $0x154] sm:$0xf0]  ;;  %v1456_v33 = vor.u32 %v1952_v27, %v1455_v26  ;;  %v1383_v35 = vld [vmem:[#allocation5 + $0x40] sm:$0xf] }
  0x25   :  { %v1583_v31 = vld [vmem:[#allocation5 + $0x1d0] sm:$0xf]  ;;  %v1984_v32 = vld [vmem:[#allocation5 + $0x1d4] sm:$0xf0]  ;;  %542 = vmatpush.bf16.msra.mxu1 %v1464_v17  ;;  %v1520_v34 = vor.u32 %v1968_v30, %v1519_v28  ;;  %v1934_v36 = vld [vmem:[#allocation5 + $0x44] sm:$0xf0] }
  0x26   :  { %556 = vmatpush.bf16.msra.mxu2 %v1528_v21  ;;  %v1447_v37 = vld [vmem:[#allocation5 + $0xc0] sm:$0xf]  ;;  %v1584_v38 = vor.u32 %v1984_v32, %v1583_v31  ;;  %v1950_v39 = vld [vmem:[#allocation5 + $0xc4] sm:$0xf0]  ;;  %v1384_v44 = vor.u32 %v1934_v36, %v1383_v35  ;;  %v1375_v47 = vld [vmem:[#allocation5 + $0x30] sm:$0xf] }
  0x27   :  { %570 = vmatpush.bf16.msra.mxu3 %v1592_v25  ;;  %v1511_v40 = vld [vmem:[#allocation5 + $0x140] sm:$0xf]  ;;  %v1966_v41 = vld [vmem:[#allocation5 + $0x144] sm:$0xf0]  ;;  %v1448_v45 = vor.u32 %v1950_v39, %v1447_v37  ;;  %v1932_v48 = vld [vmem:[#allocation5 + $0x34] sm:$0xf0] }
  0x28   :  { %v1575_v42 = vld [vmem:[#allocation5 + $0x1c0] sm:$0xf]  ;;  %v1982_v43 = vld [vmem:[#allocation5 + $0x1c4] sm:$0xf0]  ;;  %529 = vmatpush.bf16.msra.mxu0 %v1392_v29  ;;  %v1512_v46 = vor.u32 %v1966_v41, %v1511_v40  ;;  %v1439_v49 = vld [vmem:[#allocation5 + $0xb0] sm:$0xf]  ;;  %v1376_v56 = vor.u32 %v1932_v48, %v1375_v47 }
  0x29   :  { %543 = vmatpush.bf16.msra.mxu1 %v1456_v33  ;;  %v1576_v50 = vor.u32 %v1982_v43, %v1575_v42  ;;  %v1948_v51 = vld [vmem:[#allocation5 + $0xb4] sm:$0xf0]  ;;  %v1503_v52 = vld [vmem:[#allocation5 + $0x130] sm:$0xf]  ;;  %v1367_v59 = vld [vmem:[#allocation5 + $0x20] sm:$0xf] }
  0x2a   :  { %557 = vmatpush.bf16.msra.mxu2 %v1520_v34  ;;  %v1964_v53 = vld [vmem:[#allocation5 + $0x134] sm:$0xf0]  ;;  %v1567_v54 = vld [vmem:[#allocation5 + $0x1b0] sm:$0xf]  ;;  %v1440_v57 = vor.u32 %v1948_v51, %v1439_v49  ;;  %v1930_v60 = vld [vmem:[#allocation5 + $0x24] sm:$0xf0] }
  0x2b   :  { %571 = vmatpush.bf16.msra.mxu3 %v1584_v38  ;;  %v1980_v55 = vld [vmem:[#allocation5 + $0x1b4] sm:$0xf0]  ;;  %v1504_v58 = vor.u32 %v1964_v53, %v1503_v52  ;;  %v1431_v61 = vld [vmem:[#allocation5 + $0xa0] sm:$0xf]  ;;  %v1946_v63 = vld [vmem:[#allocation5 + $0xa4] sm:$0xf0]  ;;  %v1368_v4 = vor.u32 %v1930_v60, %v1367_v59 }
  0x2c   :  { %530 = vmatpush.bf16.msra.mxu0 %v1384_v44  ;;  %v1568_v62 = vor.u32 %v1980_v55, %v1567_v54  ;;  %v1495_v0 = vld [vmem:[#allocation5 + $0x120] sm:$0xf]  ;;  %v1962_v1 = vld [vmem:[#allocation5 + $0x124] sm:$0xf0]  ;;  %v1359_v5 = vld [vmem:[#allocation5 + $0x10] sm:$0xf]  ;;  %v1432_v6 = vor.u32 %v1946_v63, %v1431_v61 }
  0x2d   :  { %544 = vmatpush.bf16.msra.mxu1 %v1448_v45  ;;  %v1559_v2 = vld [vmem:[#allocation5 + $0x1a0] sm:$0xf]  ;;  %v1978_v3 = vld [vmem:[#allocation5 + $0x1a4] sm:$0xf0]  ;;  %v1496_v7 = vor.u32 %v1962_v1, %v1495_v0  ;;  %v1928_v8 = vld [vmem:[#allocation5 + $0x14] sm:$0xf0] }
  0x2e   :  { %558 = vmatpush.bf16.msra.mxu2 %v1512_v46  ;;  %v1423_v9 = vld [vmem:[#allocation5 + $0x90] sm:$0xf]  ;;  %v1944_v10 = vld [vmem:[#allocation5 + $0x94] sm:$0xf0]  ;;  %v1560_v11 = vor.u32 %v1978_v3, %v1559_v2  ;;  %v1351_v16 = vld [vmem:[#allocation5] sm:$0xf]  ;;  %v1360_v18 = vor.u32 %v1928_v8, %v1359_v5 }
  0x2f   :  { %572 = vmatpush.bf16.msra.mxu3 %v1576_v50  ;;  %v1487_v12 = vld [vmem:[#allocation5 + $0x110] sm:$0xf]  ;;  %v1960_v13 = vld [vmem:[#allocation5 + $0x114] sm:$0xf0]  ;;  %v1926_v17 = vld [vmem:[#allocation5 + $0x4] sm:$0xf0]  ;;  %v1424_v23 = vor.u32 %v1944_v10, %v1423_v9 }
  0x30   :  { %531 = vmatpush.bf16.msra.mxu0 %v1376_v56  ;;  %v1551_v14 = vld [vmem:[#allocation5 + $0x190] sm:$0xf]  ;;  %v1976_v15 = vld [vmem:[#allocation5 + $0x194] sm:$0xf0]  ;;  %v1415_v19 = vld [vmem:[#allocation5 + $0x80] sm:$0xf]  ;;  %v1488_v24 = vor.u32 %v1960_v13, %v1487_v12  ;;  %v1352_v35 = vor.u32 %v1926_v17, %v1351_v16 }
  0x31   :  { %545 = vmatpush.bf16.msra.mxu1 %v1440_v57  ;;  %v1942_v20 = vld [vmem:[#allocation5 + $0x84] sm:$0xf0]  ;;  %v1479_v21 = vld [vmem:[#allocation5 + $0x100] sm:$0xf]  ;;  %v1939_v27 = vld [vmem:[#allocation5 + $0x74] sm:$0xf]  ;;  %v1552_v28 = vor.u32 %v1976_v15, %v1551_v14 }
  0x32   :  { %559 = vmatpush.bf16.msra.mxu2 %v1504_v58  ;;  %v1958_v22 = vld [vmem:[#allocation5 + $0x104] sm:$0xf0]  ;;  %v1543_v25 = vld [vmem:[#allocation5 + $0x180] sm:$0xf]  ;;  %v1409_v29 = vld [vmem:[#allocation5 + $0x78] sm:$0xf0]  ;;  %v1416_v39 = vor.u32 %v1942_v20, %v1415_v19 }
  0x33   :  { %573 = vmatpush.bf16.msra.mxu3 %v1568_v62  ;;  %v1974_v26 = vld [vmem:[#allocation5 + $0x184] sm:$0xf0]  ;;  %v1955_v30 = vld [vmem:[#allocation5 + $0xf4] sm:$0xf]  ;;  %v1473_v31 = vld [vmem:[#allocation5 + $0xf8] sm:$0xf0]  ;;  %v1480_v40 = vor.u32 %v1958_v22, %v1479_v21  ;;  %v1412_v45 = vor.u32 %v1939_v27, %v1409_v29 }
  0x34   :  { %532 = vmatpush.bf16.msra.mxu0 %v1368_v4  ;;  %v1971_v32 = vld [vmem:[#allocation5 + $0x174] sm:$0xf]  ;;  %v1537_v33 = vld [vmem:[#allocation5 + $0x178] sm:$0xf0]  ;;  %v125_v41 = vld [vmem:[#allocation2] sm:$0xff]  ;;  %v1544_v44 = vor.u32 %v1974_v26, %v1543_v25  ;;  %v1476_v49 = vor.u32 %v1955_v30, %v1473_v31  ;;  %s2273_s3 = smov [#allocation13]  }
  0x35   :  { %546 = vmatpush.bf16.msra.mxu1 %v1432_v6  ;;  %v1987_v34 = vld [vmem:[#allocation5 + $0x1f4] sm:$0xf]  ;;  %v1601_v36 = vld [vmem:[#allocation5 + $0x1f8] sm:$0xf0]  ;;  %v129_v42 = vld [vmem:[#allocation2 + $0x20] sm:$0xff]  ;;  %v1540_v50 = vor.u32 %v1971_v32, %v1537_v33  ;;  %s1331_s23 = sshll.u32 %s2273_s3, 4  ;;  %s1332_s23 = int_to_ptr.vmem [resolvable:$true] %s1331_s23 }
  0x36   :  { %560 = vmatpush.bf16.msra.mxu2 %v1496_v7  ;;  %v127_v37 = vld [vmem:[#allocation2 + $0x10] sm:$0xff]  ;;  %v128_v43 = vld [vmem:[#allocation2 + $0x18] sm:$0xff]  ;;  %v1937_v47 = vld [vmem:[#allocation5 + $0x64] sm:$0xf]  ;;  %v1604_v54 = vor.u32 %v1987_v34, %v1601_v36  ;;  %v2353_v59 = vpack.c.bf16 %v129_v42, %v125_v41  ;;  %s1333_s26 = sshll.u32 %s2395_s9, 4  ;;  %s1334_s26 = int_to_ptr.hbm [resolvable:$true] %s1333_s26 }
  0x37   :  { %574 = vmatpush.bf16.msra.mxu3 %v1560_v11  ;;  %v131_v38 = vld [vmem:[#allocation2 + $0x30] sm:$0xff]  ;;  %v132_v46 = vld [vmem:[#allocation2 + $0x38] sm:$0xff]  ;;  %v1401_v48 = vld [vmem:[#allocation5 + $0x68] sm:$0xf0] }
  0x38   :  { %533 = vmatpush.bf16.msra.mxu0 %v1360_v18  ;;  %v1953_v51 = vld [vmem:[#allocation5 + $0xe4] sm:$0xf]  ;;  %v126_v52 = vld [vmem:[#allocation2 + $0x8] sm:$0xff]  ;;  %v2351_v55 = vpack.c.bf16 %v131_v38, %v127_v37  ;;  %v2355_v60 = vpack.c.bf16 %v132_v46, %v128_v43  ;;  %v1404_v63 = vor.u32 %v1937_v47, %v1401_v48  ;;  %v1935_v3 = vld [vmem:[#allocation5 + $0x54] sm:$0xf] }
  0x39   :  { %547 = vmatpush.bf16.msra.mxu1 %v1424_v23  ;;  %v130_v53 = vld [vmem:[#allocation2 + $0x28] sm:$0xff]  ;;  %v1969_v57 = vld [vmem:[#allocation5 + $0x164] sm:$0xf]  ;;  %v1393_v4 = vld [vmem:[#allocation5 + $0x58] sm:$0xf0] }
  0x3a   :  { %561 = vmatpush.bf16.msra.mxu2 %v1488_v24  ;;  %v1465_v56 = vld [vmem:[#allocation5 + $0xe8] sm:$0xf0]  ;;  %v1985_v61 = vld [vmem:[#allocation5 + $0x1e4] sm:$0xf]  ;;  %v2357_v0 = vpack.c.bf16 %v130_v53, %v126_v52  ;;  %v1951_v5 = vld [vmem:[#allocation5 + $0xd4] sm:$0xf]  ;;  %v1396_v12 = vor.u32 %v1935_v3, %v1393_v4 }
  0x3b   :  { %575 = vmatpush.bf16.msra.mxu3 %v1552_v28  ;;  %v1529_v58 = vld [vmem:[#allocation5 + $0x168] sm:$0xf0]  ;;  %v1468_v1 = vor.u32 %v1953_v51, %v1465_v56  ;;  %v1457_v7 = vld [vmem:[#allocation5 + $0xd8] sm:$0xf0]  ;;  %v1967_v8 = vld [vmem:[#allocation5 + $0x154] sm:$0xf] }
  0x3c   :  { %534 = vmatpush.bf16.msra.mxu0 %v1352_v35  ;;  %v1593_v62 = vld [vmem:[#allocation5 + $0x1e8] sm:$0xf0]  ;;  %v1532_v2 = vor.u32 %v1969_v57, %v1529_v58  ;;  %v1521_v9 = vld [vmem:[#allocation5 + $0x158] sm:$0xf0]  ;;  %v1983_v10 = vld [vmem:[#allocation5 + $0x1d4] sm:$0xf]  ;;  %v1460_v13 = vor.u32 %v1951_v5, %v1457_v7 }
  0x3d   :  { %548 = vmatpush.bf16.msra.mxu1 %v1416_v39  ;;  %v1596_v6 = vor.u32 %v1985_v61, %v1593_v62  ;;  %v1585_v11 = vld [vmem:[#allocation5 + $0x1d8] sm:$0xf0]  ;;  %v1524_v14 = vor.u32 %v1967_v8, %v1521_v9  ;;  %v1933_v15 = vld [vmem:[#allocation5 + $0x44] sm:$0xf]  ;;  %v1385_v16 = vld [vmem:[#allocation5 + $0x48] sm:$0xf0] }
  0x3e   :  { %562 = vmatpush.bf16.msra.mxu2 %v1480_v40  ;;  %v1949_v17 = vld [vmem:[#allocation5 + $0xc4] sm:$0xf]  ;;  %v1588_v18 = vor.u32 %v1983_v10, %v1585_v11  ;;  %v1449_v19 = vld [vmem:[#allocation5 + $0xc8] sm:$0xf0]  ;;  %v1388_v24 = vor.u32 %v1933_v15, %v1385_v16  ;;  %v1931_v27 = vld [vmem:[#allocation5 + $0x34] sm:$0xf] }
  0x3f   :  { %576 = vmatpush.bf16.msra.mxu3 %v1544_v44  ;;  %535 = vmatmul.bf16.vlgmr.msra.gmra.mxu0 %v2353_v59  ;;  %v1965_v20 = vld [vmem:[#allocation5 + $0x144] sm:$0xf]  ;;  %v1513_v21 = vld [vmem:[#allocation5 + $0x148] sm:$0xf0]  ;;  %v1452_v25 = vor.u32 %v1949_v17, %v1449_v19  ;;  %v1377_v28 = vld [vmem:[#allocation5 + $0x38] sm:$0xf0] }
  0x40   :  { %583 = vmatpush.bf16.msrb.mxu0 %v1412_v45  ;;  %549 = vmatmul.bf16.vlgmr.msra.gmra.mxu1 %v2357_v0  ;;  %v1981_v22 = vld [vmem:[#allocation5 + $0x1c4] sm:$0xf]  ;;  %v1577_v23 = vld [vmem:[#allocation5 + $0x1c8] sm:$0xf0]  ;;  %v1516_v26 = vor.u32 %v1965_v20, %v1513_v21  ;;  %v1947_v29 = vld [vmem:[#allocation5 + $0xb4] sm:$0xf]  ;;  %v1380_v36 = vor.u32 %v1931_v27, %v1377_v28 }
  0x41   :  { %597 = vmatpush.bf16.msrb.mxu1 %v1476_v49  ;;  %563 = vmatmul.bf16.vlgmr.msra.gmra.mxu2 %v2351_v55  ;;  %v1580_v30 = vor.u32 %v1981_v22, %v1577_v23  ;;  %v1441_v31 = vld [vmem:[#allocation5 + $0xb8] sm:$0xf0]  ;;  %v1963_v32 = vld [vmem:[#allocation5 + $0x134] sm:$0xf]  ;;  %v1929_v39 = vld [vmem:[#allocation5 + $0x24] sm:$0xf] }
  0x42   :  { %611 = vmatpush.bf16.msrb.mxu2 %v1540_v50  ;;  %577 = vmatmul.bf16.vlgmr.msra.gmra.mxu3 %v2355_v60  ;;  %v1505_v33 = vld [vmem:[#allocation5 + $0x138] sm:$0xf0]  ;;  %v1979_v34 = vld [vmem:[#allocation5 + $0x1b4] sm:$0xf]  ;;  %v1444_v37 = vor.u32 %v1947_v29, %v1441_v31  ;;  %v1369_v40 = vld [vmem:[#allocation5 + $0x28] sm:$0xf0] }
  0x43   :  { %625 = vmatpush.bf16.msrb.mxu3 %v1604_v54  ;;  %v1569_v35 = vld [vmem:[#allocation5 + $0x1b8] sm:$0xf0]  ;;  %v1508_v38 = vor.u32 %v1963_v32, %v1505_v33  ;;  %v1945_v41 = vld [vmem:[#allocation5 + $0xa4] sm:$0xf]  ;;  %v1433_v43 = vld [vmem:[#allocation5 + $0xa8] sm:$0xf0]  ;;  %v1372_v48 = vor.u32 %v1929_v39, %v1369_v40 }
  0x44   :  { %584 = vmatpush.bf16.msrb.mxu0 %v1404_v63  ;;  %v1572_v42 = vor.u32 %v1979_v34, %v1569_v35  ;;  %v1961_v44 = vld [vmem:[#allocation5 + $0x124] sm:$0xf]  ;;  %v1497_v45 = vld [vmem:[#allocation5 + $0x128] sm:$0xf0]  ;;  %v1436_v49 = vor.u32 %v1945_v41, %v1433_v43  ;;  %v1927_v51 = vld [vmem:[#allocation5 + $0x14] sm:$0xf] }
  0x45   :  { %598 = vmatpush.bf16.msrb.mxu1 %v1468_v1  ;;  %v1977_v46 = vld [vmem:[#allocation5 + $0x1a4] sm:$0xf]  ;;  %v1561_v47 = vld [vmem:[#allocation5 + $0x1a8] sm:$0xf0]  ;;  %v1500_v50 = vor.u32 %v1961_v44, %v1497_v45  ;;  %v1361_v52 = vld [vmem:[#allocation5 + $0x18] sm:$0xf0] }
  0x46   :  { %612 = vmatpush.bf16.msrb.mxu2 %v1532_v2  ;;  %v1943_v53 = vld [vmem:[#allocation5 + $0x94] sm:$0xf]  ;;  %v1564_v54 = vor.u32 %v1977_v46, %v1561_v47  ;;  %v1425_v56 = vld [vmem:[#allocation5 + $0x98] sm:$0xf0]  ;;  %v1364_v63 = vor.u32 %v1927_v51, %v1361_v52  ;;  %v1925_v1 = vld [vmem:[#allocation5 + $0x4] sm:$0xf] }
  0x47   :  { %626 = vmatpush.bf16.msrb.mxu3 %v1596_v6  ;;  %v1959_v57 = vld [vmem:[#allocation5 + $0x114] sm:$0xf]  ;;  %v1489_v58 = vld [vmem:[#allocation5 + $0x118] sm:$0xf0]  ;;  %v1428_v2 = vor.u32 %v1943_v53, %v1425_v56  ;;  %v1353_v4 = vld [vmem:[#allocation5 + $0x8] sm:$0xf0] }
  0x48   :  { %585 = vmatpush.bf16.msrb.mxu0 %v1396_v12  ;;  %v1975_v61 = vld [vmem:[#allocation5 + $0x194] sm:$0xf]  ;;  %v1553_v62 = vld [vmem:[#allocation5 + $0x198] sm:$0xf0]  ;;  %v1492_v3 = vor.u32 %v1959_v57, %v1489_v58  ;;  %v1941_v5 = vld [vmem:[#allocation5 + $0x84] sm:$0xf] }
  0x49   :  { %599 = vmatpush.bf16.msrb.mxu1 %v1460_v13  ;;  %v1417_v6 = vld [vmem:[#allocation5 + $0x88] sm:$0xf0]  ;;  %v1556_v7 = vor.u32 %v1975_v61, %v1553_v62  ;;  %v1957_v8 = vld [vmem:[#allocation5 + $0x104] sm:$0xf]  ;;  %v1663_v12 = vld [vmem:[#allocation8 + $0x70] sm:$0xf] }
  0x4a   :  { %613 = vmatpush.bf16.msrb.mxu2 %v1524_v14  ;;  %v1481_v9 = vld [vmem:[#allocation5 + $0x108] sm:$0xf0]  ;;  %v1973_v10 = vld [vmem:[#allocation5 + $0x184] sm:$0xf]  ;;  %v2004_v13 = vld [vmem:[#allocation8 + $0x74] sm:$0xf0]  ;;  %v1356_v14 = vor.u32 %v1925_v1, %v1353_v4  ;;  %v1420_v17 = vor.u32 %v1941_v5, %v1417_v6 }
  0x4b   :  { %627 = vmatpush.bf16.msrb.mxu3 %v1588_v18  ;;  %v1545_v11 = vld [vmem:[#allocation5 + $0x188] sm:$0xf0]  ;;  %v2003_v15 = vld [vmem:[#allocation8 + $0x74] sm:$0xf]  ;;  %v1665_v16 = vld [vmem:[#allocation8 + $0x78] sm:$0xf0]  ;;  %v1484_v18 = vor.u32 %v1957_v8, %v1481_v9  ;;  %v1664_v20 = vor.u32 %v2004_v13, %v1663_v12 }
  0x4c   :  { %586 = vmatpush.bf16.msrb.mxu0 %v1388_v24  ;;  %v1548_v19 = vor.u32 %v1973_v10, %v1545_v11  ;;  %v1668_v21 = vor.u32 %v2003_v15, %v1665_v16  ;;  %v1655_v22 = vld [vmem:[#allocation8 + $0x60] sm:$0xf]  ;;  %v2002_v23 = vld [vmem:[#allocation8 + $0x64] sm:$0xf0]  ;;  %v2001_v24 = vld [vmem:[#allocation8 + $0x64] sm:$0xf] }
  0x4d   :  { %600 = vmatpush.bf16.msrb.mxu1 %v1452_v25  ;;  %v1657_v25 = vld [vmem:[#allocation8 + $0x68] sm:$0xf0]  ;;  %v1647_v28 = vld [vmem:[#allocation8 + $0x50] sm:$0xf]  ;;  %v2000_v29 = vld [vmem:[#allocation8 + $0x54] sm:$0xf0] }
  0x4e   :  { %614 = vmatpush.bf16.msrb.mxu2 %v1516_v26  ;;  %v1656_v26 = vor.u32 %v2002_v23, %v1655_v22  ;;  %v1660_v27 = vor.u32 %v2001_v24, %v1657_v25  ;;  %v1649_v31 = vld [vmem:[#allocation8 + $0x58] sm:$0xf0]  ;;  %v1648_v32 = vor.u32 %v2000_v29, %v1647_v28  ;;  %v1639_v34 = vld [vmem:[#allocation8 + $0x40] sm:$0xf]  ;;  %v1997_v35 = vld [vmem:[#allocation8 + $0x44] sm:$0xf] }
  0x4f   :  { %628 = vmatpush.bf16.msrb.mxu3 %v1580_v30  ;;  %v1999_v30 = vld [vmem:[#allocation8 + $0x54] sm:$0xf]  ;;  %v1633_v41 = vld [vmem:[#allocation8 + $0x38] sm:$0xf0]  ;;  %v1994_v43 = vld [vmem:[#allocation8 + $0x24] sm:$0xf0] }
  0x50   :  { %587 = vmatpush.bf16.msrb.mxu0 %v1380_v36  ;;  %v1652_v33 = vor.u32 %v1999_v30, %v1649_v31  ;;  %v1995_v39 = vld [vmem:[#allocation8 + $0x34] sm:$0xf]  ;;  %v1993_v44 = vld [vmem:[#allocation8 + $0x24] sm:$0xf]  ;;  %v1625_v46 = vld [vmem:[#allocation8 + $0x28] sm:$0xf0] }
  0x51   :  { %601 = vmatpush.bf16.msrb.mxu1 %v1444_v37  ;;  %v1641_v37 = vld [vmem:[#allocation8 + $0x48] sm:$0xf0]  ;;  %v1628_v47 = vor.u32 %v1993_v44, %v1625_v46  ;;  %v1617_v52 = vld [vmem:[#allocation8 + $0x18] sm:$0xf0]  ;;  %v1990_v56 = vld [vmem:[#allocation8 + $0x4] sm:$0xf0] }
  0x52   :  { %615 = vmatpush.bf16.msrb.mxu2 %v1508_v38  ;;  %v1644_v38 = vor.u32 %v1997_v35, %v1641_v37  ;;  %v1989_v57 = vld [vmem:[#allocation8 + $0x4] sm:$0xf]  ;;  %v1609_v61 = vld [vmem:[#allocation8 + $0x8] sm:$0xf0]  ;;  %v1727_v62 = vld [vmem:[#allocation8 + $0xf0] sm:$0xf] }
  0x53   :  { %629 = vmatpush.bf16.msrb.mxu3 %v1572_v42  ;;  %v1623_v42 = vld [vmem:[#allocation8 + $0x20] sm:$0xf]  ;;  %v1612_v1 = vor.u32 %v1989_v57, %v1609_v61  ;;  %v1729_v4 = vld [vmem:[#allocation8 + $0xf8] sm:$0xf0]  ;;  %v2017_v8 = vld [vmem:[#allocation8 + $0xe4] sm:$0xf] }
  0x54   :  { %588 = vmatpush.bf16.msrb.mxu0 %v1372_v48  ;;  %v1624_v45 = vor.u32 %v1994_v43, %v1623_v42  ;;  %v1615_v48 = vld [vmem:[#allocation8 + $0x10] sm:$0xf]  ;;  %v1719_v6 = vld [vmem:[#allocation8 + $0xe0] sm:$0xf]  ;;  %v1721_v10 = vld [vmem:[#allocation8 + $0xe8] sm:$0xf0] }
  0x55   :  { %602 = vmatpush.bf16.msrb.mxu1 %v1436_v49  ;;  %v1992_v49 = vld [vmem:[#allocation8 + $0x14] sm:$0xf0]  ;;  %v1724_v11 = vor.u32 %v2017_v8, %v1721_v10  ;;  %v2367_v12 = vld [vmem:[#allocation7] sm:$0x3]  ;;  %v1711_v13 = vld [vmem:[#allocation8 + $0xd0] sm:$0xf] }
  0x56   :  { %616 = vmatpush.bf16.msrb.mxu2 %v1500_v50  ;;  %v1991_v50 = vld [vmem:[#allocation8 + $0x14] sm:$0xf]  ;;  %v1616_v51 = vor.u32 %v1992_v49, %v1615_v48  ;;  %v2013_v22 = vld [vmem:[#allocation8 + $0xc4] sm:$0xf]  ;;  %v1705_v25 = vld [vmem:[#allocation8 + $0xc8] sm:$0xf0] }
  0x57   :  { %630 = vmatpush.bf16.msrb.mxu3 %v1564_v54  ;;  %v1620_v53 = vor.u32 %v1991_v50, %v1617_v52  ;;  %v1607_v54 = vld [vmem:[#allocation8] sm:$0xf]  ;;  %v2015_v15 = vld [vmem:[#allocation8 + $0xd4] sm:$0xf]  ;;  %v1708_v28 = vor.u32 %v2013_v22, %v1705_v25  ;;  %v1695_v29 = vld [vmem:[#allocation8 + $0xb0] sm:$0xf] }
  0x58   :  { %589 = vmatpush.bf16.msrb.mxu0 %v1364_v63  ;;  %v1608_v58 = vor.u32 %v1990_v56, %v1607_v54  ;;  %v2020_v63 = vld [vmem:[#allocation8 + $0xf4] sm:$0xf0]  ;;  %v2011_v31 = vld [vmem:[#allocation8 + $0xb4] sm:$0xf]  ;;  %v1687_v37 = vld [vmem:[#allocation8 + $0xa0] sm:$0xf] }
  0x59   :  { %603 = vmatpush.bf16.msrb.mxu1 %v1428_v2  ;;  %v1728_v2 = vor.u32 %v2020_v63, %v1727_v62  ;;  %v2012_v30 = vld [vmem:[#allocation8 + $0xb4] sm:$0xf0]  ;;  %v1681_v50 = vld [vmem:[#allocation8 + $0x98] sm:$0xf0]  ;;  %v1671_v56 = vld [vmem:[#allocation8 + $0x80] sm:$0xf] }
  0x5a   :  { %617 = vmatpush.bf16.msrb.mxu2 %v1492_v3  ;;  %v2019_v3 = vld [vmem:[#allocation8 + $0xf4] sm:$0xf]  ;;  %v2008_v46 = vld [vmem:[#allocation8 + $0x94] sm:$0xf0]  ;;  %v2006_v57 = vld [vmem:[#allocation8 + $0x84] sm:$0xf0] }
  0x5b   :  { %631 = vmatpush.bf16.msrb.mxu3 %v1556_v7  ;;  %v1732_v5 = vor.u32 %v2019_v3, %v1729_v4  ;;  %v2018_v7 = vld [vmem:[#allocation8 + $0xe4] sm:$0xf0]  ;;  %v1672_v63 = vor.u32 %v2006_v57, %v1671_v56  ;;  %v1839_v56 = vld [vmem:[#allocation10 + $0xd0] sm:$0xf] }
  0x5c   :  { %590 = vmatpush.bf16.msrb.mxu0 %v1356_v14  ;;  %v1720_v9 = vor.u32 %v2018_v7, %v1719_v6  ;;  %v2016_v14 = vld [vmem:[#allocation8 + $0xd4] sm:$0xf0] }
  0x5d   :  { %604 = vmatpush.bf16.msrb.mxu1 %v1420_v17  ;;  %v1712_v16 = vor.u32 %v2016_v14, %v1711_v13  ;;  %v1713_v17 = vld [vmem:[#allocation8 + $0xd8] sm:$0xf0] }
  0x5e   :  { %618 = vmatpush.bf16.msrb.mxu2 %v1484_v18  ;;  %v203_v18 = vperm.slane %v2367_v12, 0 }
  0x5f   :  { %632 = vmatpush.bf16.msrb.mxu3 %v1548_v19  ;;  %591 = vmatmul.bf16.vlgmr.msrb.gmra.mxu0 %v2353_v59  ;;  %v1998_v59 = vld [vmem:[#allocation8 + $0x44] sm:$0xf0]  ;;  %v1716_v19 = vor.u32 %v2015_v15, %v1713_v17 }
  0x60   :  { %843 = vmatpush.bf16.msra.mxu0 %v1664_v20  ;;  %605 = vmatmul.bf16.vlgmr.msrb.gmra.mxu1 %v2357_v0  ;;  %v1640_v36 = vor.u32 %v1998_v59, %v1639_v34  ;;  %v1631_v0 = vld [vmem:[#allocation8 + $0x30] sm:$0xf]  ;;  %v1703_v20 = vld [vmem:[#allocation8 + $0xc0] sm:$0xf]  ;;  %v1697_v34 = vld [vmem:[#allocation8 + $0xb8] sm:$0xf0] }
  0x61   :  { %619 = vmatmul.bf16.vlgmr.msrb.gmra.mxu2 %v2351_v55  ;;  %v1996_v55 = vld [vmem:[#allocation8 + $0x34] sm:$0xf0]  ;;  %857 = vmatpush.bf16.msra.mxu1 %v1728_v2  ;;  %v1700_v35 = vor.u32 %v2011_v31, %v1697_v34  ;;  %v1783_v31 = vld [vmem:[#allocation10 + $0x60] sm:$0xf] }
  0x62   :  { %871 = vmatpush.bf16.msra.mxu2 %v1668_v21  ;;  %633 = vmatmul.bf16.vlgmr.msrb.gmra.mxu3 %v2355_v60  ;;  %v1632_v40 = vor.u32 %v1996_v55, %v1631_v0  ;;  %v1636_v60 = vor.u32 %v1995_v39, %v1633_v41  ;;  %v2014_v21 = vld [vmem:[#allocation8 + $0xc4] sm:$0xf0]  ;;  %v2009_v0 = vld [vmem:[#allocation8 + $0xa4] sm:$0xf]  ;;  %v1689_v41 = vld [vmem:[#allocation8 + $0xa8] sm:$0xf0] }
  0x63   :  { %885 = vmatpush.bf16.msra.mxu3 %v1732_v5  ;;  %v1704_v24 = vor.u32 %v2014_v21, %v1703_v20  ;;  %v1692_v43 = vor.u32 %v2009_v0, %v1689_v41  ;;  %v204_v5 = vperm.slane %v2367_v12, 1  ;;  %v1791_v12 = vld [vmem:[#allocation10 + $0x70] sm:$0xf]  ;;  %v2051_v0 = vld [vmem:[#allocation10 + $0xf4] sm:$0xf] }
  0x64   :  { %844 = vmatpush.bf16.msra.mxu0 %v1656_v26  ;;  %v2032_v41 = vld [vmem:[#allocation10 + $0x54] sm:$0xf0] }
  0x65   :  { %858 = vmatpush.bf16.msra.mxu1 %v1720_v9 }
  0x66   :  { %872 = vmatpush.bf16.msra.mxu2 %v1660_v27 }
  0x67   :  { %886 = vmatpush.bf16.msra.mxu3 %v1724_v11 }
  0x68   :  { %845 = vmatpush.bf16.msra.mxu0 %v1648_v32 }
  0x69   :  { %859 = vmatpush.bf16.msra.mxu1 %v1712_v16 }
  0x6a   :  { %873 = vmatpush.bf16.msra.mxu2 %v1652_v33  ;;  %v1696_v33 = vor.u32 %v2012_v30, %v1695_v29  ;;  %v1793_v29 = vld [vmem:[#allocation10 + $0x78] sm:$0xf0] }
  0x6b   :  { %887 = vmatpush.bf16.msra.mxu3 %v1716_v19 }
  0x6c   :  { %846 = vmatpush.bf16.msra.mxu0 %v1640_v36 }
  0x6d   :  { %860 = vmatpush.bf16.msra.mxu1 %v1704_v24 }
  0x6e   :  { %874 = vmatpush.bf16.msra.mxu2 %v1644_v38  ;;  %v2010_v38 = vld [vmem:[#allocation8 + $0xa4] sm:$0xf0] }
  0x6f   :  { %888 = vmatpush.bf16.msra.mxu3 %v1708_v28 }
  0x70   :  { %847 = vmatpush.bf16.msra.mxu0 %v1632_v40  ;;  %v1688_v40 = vor.u32 %v2010_v38, %v1687_v37 }
  0x71   :  { %861 = vmatpush.bf16.msra.mxu1 %v1696_v33  ;;  %v2033_v33 = vld [vmem:[#allocation10 + $0x64] sm:$0xf] }
  0x72   :  { %875 = vmatpush.bf16.msra.mxu2 %v1636_v60 }
  0x73   :  { %889 = vmatpush.bf16.msra.mxu3 %v1700_v35  ;;  %v1855_v35 = vld [vmem:[#allocation10 + $0xf0] sm:$0xf] }
  0x74   :  { %848 = vmatpush.bf16.msra.mxu0 %v1624_v45  ;;  %v1679_v45 = vld [vmem:[#allocation8 + $0x90] sm:$0xf] }
  0x75   :  { %862 = vmatpush.bf16.msra.mxu1 %v1688_v40  ;;  %v1680_v49 = vor.u32 %v2008_v46, %v1679_v45  ;;  %v1847_v45 = vld [vmem:[#allocation10 + $0xe0] sm:$0xf]  ;;  %v2050_v46 = vld [vmem:[#allocation10 + $0xe4] sm:$0xf0] }
  0x76   :  { %876 = vmatpush.bf16.msra.mxu2 %v1628_v47  ;;  %v2007_v47 = vld [vmem:[#allocation8 + $0x94] sm:$0xf] }
  0x77   :  { %890 = vmatpush.bf16.msra.mxu3 %v1692_v43  ;;  %v1684_v52 = vor.u32 %v2007_v47, %v1681_v50  ;;  %v2049_v47 = vld [vmem:[#allocation10 + $0xe4] sm:$0xf]  ;;  %v1767_v50 = vld [vmem:[#allocation10 + $0x40] sm:$0xf] }
  0x78   :  { %849 = vmatpush.bf16.msra.mxu0 %v1616_v51 }
  0x79   :  { %863 = vmatpush.bf16.msra.mxu1 %v1680_v49  ;;  %v1849_v49 = vld [vmem:[#allocation10 + $0xe8] sm:$0xf0] }
  0x7a   :  { %877 = vmatpush.bf16.msra.mxu2 %v1620_v53 }
  0x7b   :  { %891 = vmatpush.bf16.msra.mxu3 %v1684_v52  ;;  %v1852_v52 = vor.u32 %v2049_v47, %v1849_v49  ;;  %v1799_v47 = vld [vmem:[#allocation10 + $0x80] sm:$0xf]  ;;  %v2037_v49 = vld [vmem:[#allocation10 + $0x84] sm:$0xf] }
  0x7c   :  { %850 = vmatpush.bf16.msra.mxu0 %v1608_v58  ;;  %v2005_v58 = vld [vmem:[#allocation8 + $0x84] sm:$0xf] }
  0x7d   :  { %864 = vmatpush.bf16.msra.mxu1 %v1672_v63 }
  0x7e   :  { %878 = vmatpush.bf16.msra.mxu2 %v1612_v1  ;;  %v1673_v1 = vld [vmem:[#allocation8 + $0x88] sm:$0xf0] }
  0x7f   :  { %v1676_v2 = vor.u32 %v2005_v58, %v1673_v1  ;;  %v2048_v58 = vld [vmem:[#allocation10 + $0xd4] sm:$0xf0] }
  0x80   :  { %v1840_v1 = vor.u32 %v2048_v58, %v1839_v56  ;;  %v2059_v56 = vld [vmem:[#allocation11 + $0x30] sm:$0xff]  ;;  %v2058_v58 = vld [vmem:[#allocation11 + $0x28] sm:$0xff] }
  0x81   :  { %892 = vmatpush.bf16.msra.mxu3 %v1676_v2 }
  0xbc   :  { %v536_v23 = vpop.f32.mrf.mxu0 }
  0xbd   :  { %v537_v26 = vadd.f32 %v536_v23, %v203_v18  ;;  %v550_v27 = vpop.f32.mrf.mxu1 }
  0xbf   :  { %v551_v32 = vadd.f32 %v550_v27, %v537_v26  ;;  %v2036_v26 = vld [vmem:[#allocation10 + $0x74] sm:$0xf0]  ;;  %v2035_v27 = vld [vmem:[#allocation10 + $0x74] sm:$0xf] }
  0xc0   :  { %v1792_v28 = vor.u32 %v2036_v26, %v1791_v12  ;;  %v1796_v30 = vor.u32 %v2035_v27, %v1793_v29  ;;  %v1825_v12 = vld [vmem:[#allocation10 + $0xb8] sm:$0xf0]  ;;  %v1743_v27 = vld [vmem:[#allocation10 + $0x10] sm:$0xf]  ;;  %v2023_v29 = vld [vmem:[#allocation10 + $0x14] sm:$0xf] }
  0xc2   :  { %1103 = vmatpush.bf16.msrb.mxu0 %v1792_v28  ;;  %1131 = vmatpush.bf16.msrb.mxu2 %v1796_v30  ;;  %v2024_v28 = vld [vmem:[#allocation10 + $0x14] sm:$0xf0] }
  0xc3   :  { %v1744_v30 = vor.u32 %v2024_v28, %v1743_v27  ;;  %v2055_v27 = vld [vmem:[#allocation11 + $0x10] sm:$0xff]  ;;  %v2064_v28 = vld [vmem:[#allocation11 + $0x58] sm:$0xff] }
  0xc4   :  { %v564_v59 = vpop.f32.mrf.mxu2  ;;  %v538_v39 = vpop.f32.mrf.mxu0 }
  0xc5   :  { %v578_v36 = vpop.f32.mrf.mxu3  ;;  %v565_v55 = vadd.f32 %v564_v59, %v551_v32  ;;  %v539_v60 = vadd.f32 %v538_v39, %v203_v18  ;;  %v552_v42 = vpop.f32.mrf.mxu1  ;;  %v2034_v32 = vld [vmem:[#allocation10 + $0x64] sm:$0xf0]  ;;  %v1785_v59 = vld [vmem:[#allocation10 + $0x68] sm:$0xf0]  ;;  %v1775_v39 = vld [vmem:[#allocation10 + $0x50] sm:$0xf] }
  0xc6   :  { %v1784_v34 = vor.u32 %v2034_v32, %v1783_v31  ;;  %v1788_v37 = vor.u32 %v2033_v33, %v1785_v59  ;;  %v1776_v43 = vor.u32 %v2032_v41, %v1775_v39  ;;  %v1745_v31 = vld [vmem:[#allocation10 + $0x18] sm:$0xf0]  ;;  %v1815_v33 = vld [vmem:[#allocation10 + $0xa0] sm:$0xf]  ;;  %v2041_v59 = vld [vmem:[#allocation10 + $0xa4] sm:$0xf] }
  0xc7   :  { %v553_v44 = vadd.f32 %v552_v42, %v539_v60  ;;  %v579_v48 = vadd.f32 %v578_v36, %v565_v55  ;;  %v2052_v36 = vld [vmem:[#allocation10 + $0xf4] sm:$0xf0]  ;;  %v1857_v55 = vld [vmem:[#allocation10 + $0xf8] sm:$0xf0]  ;;  %v2031_v60 = vld [vmem:[#allocation10 + $0x54] sm:$0xf]  ;;  %v1748_v32 = vor.u32 %v2023_v29, %v1745_v31 }
  0xc8   :  { %v1856_v38 = vor.u32 %v2052_v36, %v1855_v35  ;;  %1104 = vmatpush.bf16.msrb.mxu0 %v1784_v34  ;;  %v1860_v40 = vor.u32 %v2051_v0, %v1857_v55  ;;  %v1777_v42 = vld [vmem:[#allocation10 + $0x58] sm:$0xf0]  ;;  %1132 = vmatpush.bf16.msrb.mxu2 %v1788_v37  ;;  %v2042_v34 = vld [vmem:[#allocation10 + $0xa4] sm:$0xf0]  ;;  %v1817_v36 = vld [vmem:[#allocation10 + $0xa8] sm:$0xf0] }
  0xc9   :  { %v639_v61 = vmax.f32 %v579_v48, 0.0  ;;  %v1848_v48 = vor.u32 %v2050_v46, %v1847_v45  ;;  %v1816_v35 = vor.u32 %v2042_v34, %v1815_v33  ;;  %v1820_v37 = vor.u32 %v2041_v59, %v1817_v36  ;;  %v2022_v0 = vld [vmem:[#allocation10 + $0x4] sm:$0xf0]  ;;  %v2021_v55 = vld [vmem:[#allocation10 + $0x4] sm:$0xf] }
  0xca   :  { %1117 = vmatpush.bf16.msrb.mxu1 %v1856_v38  ;;  %1145 = vmatpush.bf16.msrb.mxu3 %v1860_v40  ;;  %v1735_v38 = vld [vmem:[#allocation10] sm:$0xf]  ;;  %v1737_v40 = vld [vmem:[#allocation10 + $0x8] sm:$0xf0]  ;;  %v1809_v45 = vld [vmem:[#allocation10 + $0x98] sm:$0xf0] }
  0xcb   :  { %v1736_v39 = vor.u32 %v2022_v0, %v1735_v38  ;;  %v1740_v41 = vor.u32 %v2021_v55, %v1737_v40  ;;  %v2054_v29 = vld [vmem:[#allocation11 + $0x8] sm:$0xff]  ;;  %v2053_v31 = vld [vmem:[#allocation11] sm:$0xff]  ;;  %v937_v59 = vld [vmem:[%s2392_s6] sm:$0x3] }
  0xcc   :  { %v566_v51 = vpop.f32.mrf.mxu2  ;;  %1105 = vmatpush.bf16.msrb.mxu0 %v1776_v43  ;;  %v2039_v43 = vld [vmem:[#allocation10 + $0x94] sm:$0xf]  ;;  %v2061_v33 = vld [vmem:[#allocation11 + $0x40] sm:$0xff]  ;;  %v940_v40 = vperm.slane %v937_v59, 1 }
  0xcd   :  { %v567_v53 = vadd.f32 %v566_v51, %v553_v44  ;;  %v580_v54 = vpop.f32.mrf.mxu3  ;;  %v1780_v44 = vor.u32 %v2031_v60, %v1777_v42  ;;  %v2030_v51 = vld [vmem:[#allocation10 + $0x44] sm:$0xf0]  ;;  %v1807_v60 = vld [vmem:[#allocation10 + $0x90] sm:$0xf]  ;;  %v2040_v42 = vld [vmem:[#allocation10 + $0x94] sm:$0xf0]  ;;  %v1812_v46 = vor.u32 %v2039_v43, %v1809_v45 }
  0xce   :  { %v1768_v57 = vor.u32 %v2030_v51, %v1767_v50  ;;  %1118 = vmatpush.bf16.msrb.mxu1 %v1848_v48  ;;  %1146 = vmatpush.bf16.msrb.mxu3 %v1852_v52  ;;  %v2038_v48 = vld [vmem:[#allocation10 + $0x84] sm:$0xf0]  ;;  %v1801_v51 = vld [vmem:[#allocation10 + $0x88] sm:$0xf0] }
  0xcf   :  { %v581_v62 = vadd.f32 %v580_v54, %v567_v53  ;;  %v2029_v53 = vld [vmem:[#allocation10 + $0x44] sm:$0xf]  ;;  %v1769_v54 = vld [vmem:[#allocation10 + $0x48] sm:$0xf0]  ;;  %1133 = vmatpush.bf16.msrb.mxu2 %v1780_v44  ;;  %v1808_v44 = vor.u32 %v2040_v42, %v1807_v60  ;;  %v1800_v50 = vor.u32 %v2038_v48, %v1799_v47  ;;  %v1804_v52 = vor.u32 %v2037_v49, %v1801_v51 }
  0xd0   :  { %v1772_v63 = vor.u32 %v2029_v53, %v1769_v54  ;;  %1106 = vmatpush.bf16.msrb.mxu0 %v1768_v57  ;;  %v2060_v53 = vld [vmem:[#allocation11 + $0x38] sm:$0xff] }
  0xd1   :  { %v641_v3 = vmax.f32 %v581_v62, 0.0  ;;  %v1841_v62 = vld [vmem:[#allocation10 + $0xd8] sm:$0xf0] }
  0xd2   :  { %1119 = vmatpush.bf16.msrb.mxu1 %v1840_v1  ;;  %v2068_v54 = vld [vmem:[#allocation11 + $0x78] sm:$0xff] }
  0xd3   :  { %v643_v4 = vpack.c.bf16 %v641_v3, %v639_v61  ;;  %v2047_v61 = vld [vmem:[#allocation10 + $0xd4] sm:$0xf]  ;;  %1134 = vmatpush.bf16.msrb.mxu2 %v1772_v63  ;;  %v1759_v3 = vld [vmem:[#allocation10 + $0x30] sm:$0xf] }
  0xd4   :  { %v1844_v2 = vor.u32 %v2047_v61, %v1841_v62  ;;  %v677_v61 = vld [vmem:[%s2390_s4] sm:$0x3] }
  0xd5   :  { %851 = vmatmul.bf16.vlgmr.msra.gmra.mxu0 %v643_v4  ;;  %879 = vmatmul.bf16.vlgmr.msra.gmra.mxu2 %v643_v4  ;;  %v2028_v4 = vld [vmem:[#allocation10 + $0x34] sm:$0xf0]  ;;  %v679_v1 = vperm.slane %v677_v61, 0 }
  0xd6   :  { %1147 = vmatpush.bf16.msrb.mxu3 %v1844_v2 }
  0xdc   :  { %v592_v6 = vpop.f32.mrf.mxu0 }
  0xdd   :  { %v606_v7 = vpop.f32.mrf.mxu1  ;;  %v593_v8 = vadd.f32 %v592_v6, %v204_v5  ;;  %v1760_v6 = vor.u32 %v2028_v4, %v1759_v3 }
  0xdf   :  { %v607_v10 = vadd.f32 %v606_v7, %v593_v8  ;;  %v1761_v7 = vld [vmem:[#allocation10 + $0x38] sm:$0xf0]  ;;  %1107 = vmatpush.bf16.msrb.mxu0 %v1760_v6 }
  0xe4   :  { %v620_v9 = vpop.f32.mrf.mxu2  ;;  %v594_v13 = vpop.f32.mrf.mxu0 }
  0xe5   :  { %v634_v11 = vpop.f32.mrf.mxu3  ;;  %v595_v14 = vadd.f32 %v594_v13, %v204_v5  ;;  %v621_v15 = vadd.f32 %v620_v9, %v607_v10  ;;  %v608_v16 = vpop.f32.mrf.mxu1  ;;  %v2027_v5 = vld [vmem:[#allocation10 + $0x34] sm:$0xf]  ;;  %v1831_v9 = vld [vmem:[#allocation10 + $0xc0] sm:$0xf]  ;;  %v2046_v10 = vld [vmem:[#allocation10 + $0xc4] sm:$0xf0] }
  0xe6   :  { %v1764_v8 = vor.u32 %v2027_v5, %v1761_v7  ;;  %v1832_v13 = vor.u32 %v2046_v10, %v1831_v9  ;;  %v680_v5 = vperm.slane %v677_v61, 1 }
  0xe7   :  { %v609_v17 = vadd.f32 %v608_v16, %v595_v14  ;;  %v635_v19 = vadd.f32 %v634_v11, %v621_v15  ;;  %v2045_v11 = vld [vmem:[#allocation10 + $0xc4] sm:$0xf]  ;;  %v1833_v14 = vld [vmem:[#allocation10 + $0xc8] sm:$0xf0]  ;;  %v1751_v16 = vld [vmem:[#allocation10 + $0x20] sm:$0xf] }
  0xe8   :  { %1135 = vmatpush.bf16.msrb.mxu2 %v1764_v8  ;;  %v1836_v15 = vor.u32 %v2045_v11, %v1833_v14  ;;  %1120 = vmatpush.bf16.msrb.mxu1 %v1832_v13 }
  0xe9   :  { %v640_v23 = vmax.f32 %v635_v19, 0.0 }
  0xea   :  { %1148 = vmatpush.bf16.msrb.mxu3 %v1836_v15 }
  0xec   :  { %v622_v18 = vpop.f32.mrf.mxu2 }
  0xed   :  { %v623_v20 = vadd.f32 %v622_v18, %v609_v17  ;;  %v636_v21 = vpop.f32.mrf.mxu3  ;;  %v2026_v17 = vld [vmem:[#allocation10 + $0x24] sm:$0xf0]  ;;  %v2025_v18 = vld [vmem:[#allocation10 + $0x24] sm:$0xf] }
  0xee   :  { %v1752_v19 = vor.u32 %v2026_v17, %v1751_v16 }
  0xef   :  { %v637_v22 = vadd.f32 %v636_v21, %v623_v20  ;;  %v1753_v20 = vld [vmem:[#allocation10 + $0x28] sm:$0xf0] }
  0xf0   :  { %v1756_v21 = vor.u32 %v2025_v18, %v1753_v20  ;;  %1108 = vmatpush.bf16.msrb.mxu0 %v1752_v19 }
  0xf1   :  { %v642_v24 = vmax.f32 %v637_v22, 0.0  ;;  %v1823_v22 = vld [vmem:[#allocation10 + $0xb0] sm:$0xf] }
  0xf2   :  { %1136 = vmatpush.bf16.msrb.mxu2 %v1756_v21 }
  0xf3   :  { %v644_v25 = vpack.c.bf16 %v642_v24, %v640_v23  ;;  %v2044_v23 = vld [vmem:[#allocation10 + $0xb4] sm:$0xf0]  ;;  %v2043_v24 = vld [vmem:[#allocation10 + $0xb4] sm:$0xf] }
  0xf4   :  { %v1828_v26 = vor.u32 %v2043_v24, %v1825_v12  ;;  %1109 = vmatpush.bf16.msrb.mxu0 %v1744_v30  ;;  %v2057_v24 = vld [vmem:[#allocation11 + $0x20] sm:$0xff]  ;;  %v2056_v12 = vld [vmem:[#allocation11 + $0x18] sm:$0xff]  ;;  %v2063_v30 = vld [vmem:[#allocation11 + $0x50] sm:$0xff] }
  0xf5   :  { %865 = vmatmul.bf16.vlgmr.msra.gmra.mxu1 %v644_v25  ;;  %893 = vmatmul.bf16.vlgmr.msra.gmra.mxu3 %v644_v25  ;;  %v1824_v25 = vor.u32 %v2044_v23, %v1823_v22  ;;  %v2067_v23 = vld [vmem:[#allocation11 + $0x70] sm:$0xff] }
  0xf6   :  { %1149 = vmatpush.bf16.msrb.mxu3 %v1828_v26  ;;  %1137 = vmatpush.bf16.msrb.mxu2 %v1748_v32  ;;  %v2065_v26 = vld [vmem:[#allocation11 + $0x60] sm:$0xff]  ;;  %v2062_v32 = vld [vmem:[#allocation11 + $0x48] sm:$0xff] }
  0xf7   :  { %1121 = vmatpush.bf16.msrb.mxu1 %v1824_v25  ;;  %v2066_v25 = vld [vmem:[#allocation11 + $0x68] sm:$0xff] }
  0xf8   :  { %1110 = vmatpush.bf16.msrb.mxu0 %v1736_v39 }
  0xfa   :  { %1150 = vmatpush.bf16.msrb.mxu3 %v1820_v37  ;;  %1138 = vmatpush.bf16.msrb.mxu2 %v1740_v41  ;;  %v939_v37 = vperm.slane %v937_v59, 0 }
  0xfb   :  { %1122 = vmatpush.bf16.msrb.mxu1 %v1816_v35 }
  0xfc   :  { %1297 = vmatpush.bf16.msra.mxu0 %v2060_v53 }
  0xfe   :  { %1151 = vmatpush.bf16.msrb.mxu3 %v1812_v46 }
  0xff   :  { %1123 = vmatpush.bf16.msrb.mxu1 %v1808_v44 }
 0x100   :  { %1298 = vmatpush.bf16.msra.mxu0 %v2059_v56 }
 0x102   :  { %1152 = vmatpush.bf16.msrb.mxu3 %v1804_v52 }
 0x103   :  { %1124 = vmatpush.bf16.msrb.mxu1 %v1800_v50 }
 0x104   :  { %1299 = vmatpush.bf16.msra.mxu0 %v2058_v58 }
 0x107   :  { %1311 = vmatpush.bf16.msra.mxu1 %v2068_v54 }
 0x108   :  { %1300 = vmatpush.bf16.msra.mxu0 %v2057_v24 }
 0x10b   :  { %1312 = vmatpush.bf16.msra.mxu1 %v2067_v23 }
 0x10c   :  { %1301 = vmatpush.bf16.msra.mxu0 %v2056_v12 }
 0x10f   :  { %1313 = vmatpush.bf16.msra.mxu1 %v2066_v25 }
 0x110   :  { %1302 = vmatpush.bf16.msra.mxu0 %v2055_v27 }
 0x113   :  { %1314 = vmatpush.bf16.msra.mxu1 %v2065_v26 }
 0x114   :  { %1303 = vmatpush.bf16.msra.mxu0 %v2054_v29 }
 0x117   :  { %1315 = vmatpush.bf16.msra.mxu1 %v2064_v28 }
 0x118   :  { %1304 = vmatpush.bf16.msra.mxu0 %v2053_v31 }
 0x11b   :  { %1316 = vmatpush.bf16.msra.mxu1 %v2063_v30 }
 0x11f   :  { %1317 = vmatpush.bf16.msra.mxu1 %v2062_v32 }
 0x123   :  { %1318 = vmatpush.bf16.msra.mxu1 %v2061_v33 }
 0x152   :  { %v852_v57 = vpop.f32.mrf.mxu0 }
 0x153   :  { %v853_v3 = vadd.f32 %v852_v57, %v679_v1  ;;  %v2082_v57 = vld [vmem:[%s2394_s8] ss:$0 sm:$0xff] }
 0x158   :  { %v880_v62 = vpop.f32.mrf.mxu2 }
 0x159   :  { %v881_v11 = vadd.f32 %v880_v62, %v680_v5 }
 0x15a   :  { %v854_v2 = vpop.f32.mrf.mxu0 }
 0x15b   :  { %v855_v6 = vadd.f32 %v854_v2, %v679_v1 }
 0x160   :  { %v882_v10 = vpop.f32.mrf.mxu2 }
 0x161   :  { %v883_v15 = vadd.f32 %v882_v10, %v680_v5 }
 0x172   :  { %v866_v63 = vpop.f32.mrf.mxu1 }
 0x173   :  { %v867_v7 = vadd.f32 %v866_v63, %v853_v3 }
 0x175   :  { %v899_v13 = vmax.f32 %v867_v7, 0.0 }
 0x178   :  { %v894_v4 = vpop.f32.mrf.mxu3 }
 0x179   :  { %v895_v16 = vadd.f32 %v894_v4, %v881_v11 }
 0x17a   :  { %v868_v8 = vpop.f32.mrf.mxu1 }
 0x17b   :  { %v869_v9 = vadd.f32 %v868_v8, %v855_v6  ;;  %v900_v20 = vmax.f32 %v895_v16, 0.0 }
 0x17d   :  { %v901_v14 = vmax.f32 %v869_v9, 0.0 }
 0x17f   :  { %v903_v17 = vpack.c.bf16 %v901_v14, %v899_v13 }
 0x180   :  { %v896_v18 = vpop.f32.mrf.mxu3 }
 0x181   :  { %v897_v19 = vadd.f32 %v896_v18, %v883_v15  ;;  %1111 = vmatmul.bf16.vlgmr.msrb.gmra.mxu0 %v903_v17  ;;  %1139 = vmatmul.bf16.vlgmr.msrb.gmra.mxu2 %v903_v17 }
 0x183   :  { %v902_v21 = vmax.f32 %v897_v19, 0.0 }
 0x185   :  { %v904_v22 = vpack.c.bf16 %v902_v21, %v900_v20 }
 0x187   :  { %1125 = vmatmul.bf16.vlgmr.msrb.gmra.mxu1 %v904_v22  ;;  %1153 = vmatmul.bf16.vlgmr.msrb.gmra.mxu3 %v904_v22 }
 0x1fe   :  { %v1112_v34 = vpop.f32.mrf.mxu0 }
 0x1ff   :  { %v1113_v0 = vadd.f32 %v1112_v34, %v939_v37 }
 0x204   :  { %v1126_v35 = vpop.f32.mrf.mxu1  ;;  %v1140_v36 = vpop.f32.mrf.mxu2 }
 0x205   :  { %v1127_v39 = vadd.f32 %v1126_v35, %v1113_v0  ;;  %v1141_v45 = vadd.f32 %v1140_v36, %v940_v40 }
 0x206   :  { %v1114_v38 = vpop.f32.mrf.mxu0 }
 0x207   :  { %v1115_v41 = vadd.f32 %v1114_v38, %v939_v37  ;;  %v1159_v44 = vmax.f32 %v1127_v39, 0.0 }
 0x20a   :  { %v1154_v55 = vpop.f32.mrf.mxu3 }
 0x20b   :  { %v1155_v47 = vadd.f32 %v1154_v55, %v1141_v45 }
 0x20c   :  { %v1128_v60 = vpop.f32.mrf.mxu1  ;;  %v1142_v43 = vpop.f32.mrf.mxu2 }
 0x20d   :  { %v1129_v42 = vadd.f32 %v1128_v60, %v1115_v41  ;;  %v1143_v49 = vadd.f32 %v1142_v43, %v940_v40  ;;  %v1160_v52 = vmax.f32 %v1155_v47, 0.0 }
 0x20f   :  { %v1161_v46 = vmax.f32 %v1129_v42, 0.0 }
 0x211   :  { %v1163_v48 = vpack.c.bf16 %v1161_v46, %v1159_v44 }
 0x212   :  { %v1156_v50 = vpop.f32.mrf.mxu3 }
 0x213   :  { %v1157_v51 = vadd.f32 %v1156_v50, %v1143_v49  ;;  %1305 = vmatmul.bf16.vlgmr.msra.gmra.mxu0 %v1163_v48 }
 0x215   :  { %v1162_v53 = vmax.f32 %v1157_v51, 0.0 }
 0x217   :  { %v1164_v54 = vpack.c.bf16 %v1162_v53, %v1160_v52 }
 0x219   :  { %1319 = vmatmul.bf16.vlgmr.msra.gmra.mxu1 %v1164_v54 }
 0x290   :  { %v1306_v56 = vpop.f32.mrf.mxu0 }
 0x291   :  { %v1307_v58 = vadd.f32 %v2082_v57, %v1306_v56 }
 0x296   :  { %v1320_v61 = vpop.f32.mrf.mxu1 }
 0x297   :  { %v1321_v62 = vadd.f32 %v1320_v61, %v1307_v58 }
 0x298   :  { %v1308_v63 = vpop.f32.mrf.mxu0 }
 0x299   :  { %1325 = vst [vmem:[#allocation13] sm:$0xff] %v1321_v62  ;;  %v1309_v1 = vadd.f32 %v2082_v57, %v1308_v63 }
 0x29e   :  { %v1322_v2 = vpop.f32.mrf.mxu1 }
 0x29f   :  { %v1323_v3 = vadd.f32 %v1322_v2, %v1309_v1 }
 0x2a1   :  { %1326 = vst [vmem:[#allocation13 + $0x8] sm:$0xff] %v1323_v3 }
 0x2a2   :  { %1339 = dma.vmem_to_hbm [thread:$0]  %s1332_s23, 256, %s1334_s26, [#allocation4], %s2262_s17, %s2262_s17, %s2263_s18  }
 0x2a3   :  { %2259 = dma.done.wait [#allocation4], 256  }
 0x2a4   :  { %2260 = vsyncadd [#allocation4], 4294967040 }
 0x2a5   :  { %1344 = vsyncpa [#allocation3], 1 }
 0x2a6   :  { %1345 = vsyncpa [#allocation6], 1 }
 0x2a7   :  { %1346 = vsyncpa [#allocation9], 1 }
 0x2a8   :  { %1347 = vsyncpa [#allocation12], 1 }
 0x2a9   :  { %1348 = vsyncpa [#allocation4], 1 }

</bundles_post_ra>
